<compile_context>
chip_gen: v6e
topology: v6e:2x2x1
jax: 0.10.0
libtpu: 0.0.40
codegen_flags: <defaults>
</compile_context>

<pallas_src>
import jax
import jax.numpy as jnp
from jax.experimental import pallas as pl
from jax.experimental.pallas import tpu as pltpu

_LANE = 128        # lane width: last dims padded to a multiple of this
_SUBLANE = 8       # sublane width: row tiles are multiples of this
_NEG_BIG = -1e30   # bias for padded softmax columns -> exp() underflows to exactly 0


def _round_up(x, m):
    return pl.cdiv(x, m) * m


def _pad2d(x, rows, cols, fill=0.0):
    r, c = x.shape
    if r == rows and c == cols:
        return x
    return jnp.full((rows, cols), fill, x.dtype).at[:r, :c].set(x)


def prepare_params(weight, bias):
    """One-time parameter transform.

    weight: (in_size, out_size)  -- i.e. the TRANSPOSE of PyTorch nn.Linear's (out, in).
    bias:   (out_size,)

    Returns (w_padded, b_padded) with:
      * features padded to multiples of 128 (lane-dense MXU / stores),
      * the 1/sqrt(in_size) attention scale folded into the weight,
      * padded bias columns set to a large negative so softmax gives them ~0 mass.
    """
    in_size, out_size = weight.shape
    in_pad = _round_up(in_size, _LANE)
    out_pad = _round_up(out_size, _LANE)

    scale = 1.0 / jnp.sqrt(jnp.float32(in_size))
    w_scaled = weight.astype(jnp.float32) * scale                 # (q*k*s) @ W == (q*k) @ (s*W)
    w_padded = _pad2d(w_scaled, in_pad, out_pad, fill=0.0)
    b_padded = jnp.full((1, out_pad), _NEG_BIG, jnp.float32)
    b_padded = b_padded.at[0, :out_size].set(bias.astype(jnp.float32))
    return w_padded, b_padded


def _onedim_attention_kernel(q_ref, k_ref, v_ref, w_ref, b_ref, o_ref):
    # scaled elementwise product (scale already folded into W) -- f32 on the VPU
    a = q_ref[...].astype(jnp.float32) * k_ref[...].astype(jnp.float32)

    # linear layer: (tm, in_pad) @ (in_pad, out_pad) + bias  (MXU, f32 accumulate)
    logits = jnp.dot(a, w_ref[...], preferred_element_type=jnp.float32)
    logits = logits + b_ref[...]          # (1, out_pad) broadcast; padded cols ~ -1e30

    # numerically stable softmax over the (padded) last dim
    m = jnp.max(logits, axis=-1, keepdims=True)
    e = jnp.exp(logits - m)               # padded cols underflow to 0
    denom = jnp.sum(e, axis=-1, keepdims=True)
    sm = e * pl.reciprocal(denom, approx=True)   # EUP vrcp slot, VALU stays free

    # elementwise gating by v (padded v cols are 0)
    o_ref[...] = (sm * v_ref[...].astype(jnp.float32)).astype(o_ref.dtype)


def onedim_attention(q, k, v, w_padded, b_padded, *, row_tile=512):
    """q, k: (B, S, in_size); v: (B, S, out_size).

    w_padded / b_padded come from prepare_params() (scale folded, 128-padded features).
    """
    assert row_tile % _SUBLANE == 0
    B, S, in_size = q.shape
    out_size = v.shape[-1]
    in_pad, out_pad = w_padded.shape
    assert in_pad >= in_size and out_pad >= out_size

    M = B * S
    rt = min(row_tile, _round_up(M, _SUBLANE))   # don't over-tile tiny problems
    M_pad = _round_up(M, rt)
    grid_m = M_pad // rt

    # Pad rows and feature dims to the lane-dense / tiled layout.
    # TODO(synk): in a real model keep q/k/v resident in this padded layout instead of
    # padding per call.
    q2 = _pad2d(q.reshape(M, in_size), M_pad, in_pad)
    k2 = _pad2d(k.reshape(M, in_size), M_pad, in_pad)
    v2 = _pad2d(v.reshape(M, out_size), M_pad, out_pad)

    # VMEM budget: double-buffered q/k/v/out tiles + (double-buffered) resident weight/bias,
    # with headroom; capped comfortably below v7x's 64 MiB physical VMEM.
    isz_q = q2.dtype.itemsize
    isz_v = v2.dtype.itemsize
    tile_bytes = rt * (2 * in_pad * isz_q + out_pad * isz_v + out_pad * isz_q)
    resident_bytes = in_pad * out_pad * 4 + out_pad * 4
    vmem_need = 2 * tile_bytes + 2 * resident_bytes
    vmem_limit = int(min(max(2 * vmem_need, 8 << 20), 48 << 20))

    out2 = pl.pallas_call(
        _onedim_attention_kernel,
        out_shape=jax.ShapeDtypeStruct((M_pad, out_pad), q.dtype),
        grid_spec=pltpu.PrefetchScalarGridSpec(
            num_scalar_prefetch=0,
            grid=(grid_m,),
            in_specs=[
                pl.BlockSpec((rt, in_pad), lambda i: (i, 0)),      # q rows
                pl.BlockSpec((rt, in_pad), lambda i: (i, 0)),      # k rows
                pl.BlockSpec((rt, out_pad), lambda i: (i, 0)),     # v rows
                pl.BlockSpec((in_pad, out_pad), lambda i: (0, 0)), # weight (resident)
                pl.BlockSpec((1, out_pad), lambda i: (0, 0)),      # bias (resident)
            ],
            out_specs=pl.BlockSpec((rt, out_pad), lambda i: (i, 0)),
        ),
        compiler_params=pltpu.CompilerParams(
            dimension_semantics=("parallel",),   # shards the row loop across v7x's 2 TCs
            vmem_limit_bytes=vmem_limit,
        ),
    )(q2, k2, v2, w_padded, b_padded)

    return out2[:M, :out_size].reshape(B, S, out_size)


def _reference(q, k, v, weight, bias, in_size):
    a = (q * k) / jnp.sqrt(jnp.float32(in_size))
    logits = jnp.einsum("bsi,io->bso", a, weight) + bias
    sm = jax.nn.softmax(logits, axis=-1)
    return sm * v


def _run_case(key, B, S, in_size, out_size, row_tile):
    kq, kk, kv, kw, kb = jax.random.split(key, 5)
    q = jax.random.normal(kq, (B, S, in_size), dtype=jnp.float32)
    k = jax.random.normal(kk, (B, S, in_size), dtype=jnp.float32)
    v = jax.random.normal(kv, (B, S, out_size), dtype=jnp.float32)

    # nn.Linear(in_size, out_size) has weight (out, in), bias (out,). We keep the weight
    # transposed as (in, out) so the kernel computes x @ W directly.
    bound = 1.0 / jnp.sqrt(jnp.float32(in_size))
    weight = jax.random.uniform(kw, (in_size, out_size), dtype=jnp.float32,
                                minval=-bound, maxval=bound)
    bias = jax.random.uniform(kb, (out_size,), dtype=jnp.float32,
                              minval=-bound, maxval=bound)

    w_p, b_p = prepare_params(weight, bias)          # one-time parameter transform
    out = onedim_attention(q, k, v, w_p, b_p, row_tile=row_tile)
    out = jax.block_until_ready(out)

    ref = _reference(q, k, v, weight, bias, in_size)
    assert out.shape == (B, S, out_size)
    # approx=True reciprocal => slightly relaxed tolerance vs exact division.
    assert jnp.allclose(out, ref, atol=1e-3, rtol=1e-3), "mismatch vs reference"


if __name__ == "__main__":
    key = jax.random.PRNGKey(0)
    k1, k2 = jax.random.split(key)

    # Small shapes consistent with the module's forward (padded to 128 lanes internally).
    _run_case(k1, B=2, S=8, in_size=32, out_size=32, row_tile=512)
    # Row count not divisible by the tile -> exercises cdiv grid + padded tail path.
    _run_case(k2, B=3, S=5, in_size=32, out_size=32, row_tile=8)

    print("KERNEL_OK")
</pallas_src>

<mosaic_0001>
module attributes {stable_mosaic.version = 11 : i64} {
  func.func @_onedim_attention_kernel(%arg0: i32, %arg1: memref<16x128xf32, #tpu.memory_space<vmem>>, %arg2: memref<16x128xf32, #tpu.memory_space<vmem>>, %arg3: memref<16x128xf32, #tpu.memory_space<vmem>>, %arg4: memref<128x128xf32, #tpu.memory_space<vmem>>, %arg5: memref<1x128xf32, #tpu.memory_space<vmem>>, %arg6: memref<16x128xf32, #tpu.memory_space<vmem>>) attributes {dimension_semantics = [#tpu.dimension_semantics<parallel>], iteration_bounds = array<i64: 1>, scalar_prefetch = 0 : i64, scratch_operands = 0 : i64, tpu.core_type = #tpu.core_type<tc>, window_params = [{transform_indices = @transform_0, window_bounds = array<i64: 16, 128>}, {transform_indices = @transform_1, window_bounds = array<i64: 16, 128>}, {transform_indices = @transform_2, window_bounds = array<i64: 16, 128>}, {pipeline_mode = #tpu.pipeline_mode<synchronous>, transform_indices = @transform_3, window_bounds = array<i64: 128, 128>}, {pipeline_mode = #tpu.pipeline_mode<synchronous>, transform_indices = @transform_4, window_bounds = array<i64: 1, 128>}, {transform_indices = @transform_5, window_bounds = array<i64: 16, 128>}]} {
    %c0 = arith.constant 0 : index
    %c0_0 = arith.constant 0 : index
    %0 = vector.load %arg1[%c0, %c0_0] : memref<16x128xf32, #tpu.memory_space<vmem>>, vector<16x128xf32>
    %c0_1 = arith.constant 0 : index
    %c0_2 = arith.constant 0 : index
    %1 = vector.load %arg2[%c0_1, %c0_2] : memref<16x128xf32, #tpu.memory_space<vmem>>, vector<16x128xf32>
    %2 = arith.mulf %0, %1 : vector<16x128xf32>
    %c0_3 = arith.constant 0 : index
    %c0_4 = arith.constant 0 : index
    %3 = vector.load %arg4[%c0_3, %c0_4] : memref<128x128xf32, #tpu.memory_space<vmem>>, vector<128x128xf32>
    %cst = arith.constant dense<0.000000e+00> : vector<16x128xf32>
    %4 = tpu.matmul %2, %3, %cst {dimension_numbers = #tpu.dot_dimension_numbers<[1], [0], [0], [1], [0, 0, 1, 1], [], []>} : vector<16x128xf32>, vector<128x128xf32>, vector<16x128xf32> -> vector<16x128xf32>
    %c0_5 = arith.constant 0 : index
    %c0_6 = arith.constant 0 : index
    %5 = vector.load %arg5[%c0_5, %c0_6] : memref<1x128xf32, #tpu.memory_space<vmem>>, vector<1x128xf32>
    %6 = vector.broadcast %5 : vector<1x128xf32> to vector<16x128xf32>
    %7 = arith.addf %4, %6 : vector<16x128xf32>
    %cst_7 = arith.constant dense<0xFF800000> : vector<16xf32>
    %8 = vector.multi_reduction <maximumf>, %7, %cst_7 [1] : vector<16x128xf32> to vector<16xf32>
    %9 = vector.shape_cast %8 : vector<16xf32> to vector<16x1xf32>
    %10 = vector.broadcast %9 : vector<16x1xf32> to vector<16x128xf32>
    %11 = arith.subf %7, %10 : vector<16x128xf32>
    %12 = math.exp %11 : vector<16x128xf32>
    %cst_8 = arith.constant dense<0.000000e+00> : vector<16xf32>
    %13 = vector.multi_reduction <add>, %12, %cst_8 [1] : vector<16x128xf32> to vector<16xf32>
    %14 = vector.shape_cast %13 : vector<16xf32> to vector<16x1xf32>
    %15 = tpu.reciprocal %14 {approx = true} : vector<16x1xf32> -> vector<16x1xf32>
    %16 = vector.broadcast %15 : vector<16x1xf32> to vector<16x128xf32>
    %17 = arith.mulf %12, %16 : vector<16x128xf32>
    %c0_9 = arith.constant 0 : index
    %c0_10 = arith.constant 0 : index
    %18 = vector.load %arg3[%c0_9, %c0_10] : memref<16x128xf32, #tpu.memory_space<vmem>>, vector<16x128xf32>
    %19 = arith.mulf %17, %18 : vector<16x128xf32>
    %c0_11 = arith.constant 0 : index
    %c0_12 = arith.constant 0 : index
    %20 = vector.load %arg6[%c0_11, %c0_12] : memref<16x128xf32, #tpu.memory_space<vmem>>, vector<16x128xf32>
    tpu.vector_store %arg6[%c0_11, %c0_12], %19 {strides = array<i32>} : memref<16x128xf32, #tpu.memory_space<vmem>>, vector<16x128xf32>,
    return
  }
  func.func @transform_0(%arg0: i32) -> (i32, i32) {
    %c0_i32 = arith.constant 0 : i32
    %c0_i32_0 = arith.constant 0 : i32
    return %arg0, %c0_i32 : i32, i32
  }
  func.func @transform_1(%arg0: i32) -> (i32, i32) {
    %c0_i32 = arith.constant 0 : i32
    %c0_i32_0 = arith.constant 0 : i32
    return %arg0, %c0_i32 : i32, i32
  }
  func.func @transform_2(%arg0: i32) -> (i32, i32) {
    %c0_i32 = arith.constant 0 : i32
    %c0_i32_0 = arith.constant 0 : i32
    return %arg0, %c0_i32 : i32, i32
  }
  func.func @transform_3(%arg0: i32) -> (i32, i32) {
    %c0_i32 = arith.constant 0 : i32
    %c0_i32_0 = arith.constant 0 : i32
    %c0_i32_1 = arith.constant 0 : i32
    return %c0_i32, %c0_i32_0 : i32, i32
  }
  func.func @transform_4(%arg0: i32) -> (i32, i32) {
    %c0_i32 = arith.constant 0 : i32
    %c0_i32_0 = arith.constant 0 : i32
    %c0_i32_1 = arith.constant 0 : i32
    return %c0_i32, %c0_i32_0 : i32, i32
  }
  func.func @transform_5(%arg0: i32) -> (i32, i32) {
    %c0_i32 = arith.constant 0 : i32
    %c0_i32_0 = arith.constant 0 : i32
    return %arg0, %c0_i32 : i32, i32
  }
}

</mosaic_0001>

<bundles_post_ra>
// kernel: tpu_custom_call.1
= control target key start
LH: loop header
LB: loop body
LE: loop exit
PB: predicated region body
PF: predicated region fallthrough
CT: control target
= control target key end

     0   :  { %10 = vsyncpa [#allocation3], 0  ;;  %s470_s0 = inlined_call_operand.hbm [shape: f32[16,128], index: 0, kind: input, shape index: {}]   ;;  %s471_s1 = inlined_call_operand.hbm [shape: f32[16,128], index: 1, kind: input, shape index: {}]   ;;  %s472_s2 = inlined_call_operand.hbm [shape: f32[16,128], index: 2, kind: input, shape index: {}]   ;;  %s473_s3 = inlined_call_operand.hbm [shape: f32[128,128], index: 3, kind: input, shape index: {}]   ;;  %s474_s4 = inlined_call_operand.vmem [shape: f32[1,128], index: 4, kind: input, shape index: {}]   ;;  %s475_s5 = inlined_call_operand.hbm [shape: f32[16,128], index: 5, kind: output, shape index: {}]  }
   0x1   :  { %11 = vsyncpa [#allocation6], 0 }
   0x2   :  { %12 = vsyncpa [#allocation9], 0 }
   0x3   :  { %13 = vsyncpa [#allocation4], 0  ;;  %s400_s18 = smov [#allocation5]   ;;  %s401_s20 = smov [#allocation2]  }
   0x4   :  { %s31_s19 = sshll.u32 %s400_s18, 4  ;;  %s19_s21 = sshll.u32 %s401_s20, 4  ;;  %s32_s19 = int_to_ptr.vmem [resolvable:$true] %s31_s19  ;;  %s20_s21 = int_to_ptr.vmem [resolvable:$true] %s19_s21 }
   0x5   :  { %s300_s22 = scalar_lea.vmem %s32_s19, 256  ;;  %p305_p1 = scmp.lt.s32.totalorder %s32_s19, %s32_s19 }
   0x6   :  { %p301_p0 = scmp.ne.s32.totalorder %s32_s19, %s300_s22  ;;  %p306_p2 = scmp.lt.s32.totalorder %s300_s22, %s300_s22 }
   0x8   :  { %p307_p3 = por %p306_p2, %p305_p1 }
   0xa   :  { %p308_p4 = pnand %p307_p3, %p301_p0 }
   0xc   :  { %311 = shalt.err (!%p308_p4)
}
   0xd   :  { %s402_s23 = smov 128   ;;  %s403_s24 = smov 8  }
   0xe   :  { %37 = dma.hbm_to_vmem [thread:$0]  %s471_s1, 256, %s32_s19, [#allocation6], %s402_s23, %s402_s23, %s403_s24  }
   0xf   :  { %s320_s27 = scalar_lea.vmem %s20_s21, 256  ;;  %p325_p6 = scmp.lt.s32.totalorder %s20_s21, %s20_s21 }
  0x10   :  { %p321_p5 = scmp.ne.s32.totalorder %s20_s21, %s320_s27  ;;  %p326_p7 = scmp.lt.s32.totalorder %s320_s27, %s320_s27 }
  0x12   :  { %p327_p8 = por %p326_p7, %p325_p6 }
  0x14   :  { %p328_p9 = pnand %p327_p8, %p321_p5 }
  0x16   :  { %331 = shalt.err (!%p328_p9)
}
  0x17   :  { %25 = dma.hbm_to_vmem [thread:$0]  %s470_s0, 256, %s20_s21, [#allocation3], %s402_s23, %s402_s23, %s403_s24  }
  0x18   :  { %s404_s30 = smov [#allocation7]   ;;  %s405_s7 = smov [#allocation8]  }
  0x19   :  { %s43_s6 = sshll.u32 %s404_s30, 4  ;;  %s55_s8 = sshll.u32 %s405_s7, 4  ;;  %s44_s6 = int_to_ptr.vmem [resolvable:$true] %s43_s6  ;;  %s56_s8 = int_to_ptr.vmem [resolvable:$true] %s55_s8 }
  0x1a   :  { %s340_s1 = scalar_lea.vmem %s44_s6, 256  ;;  %p345_p11 = scmp.lt.s32.totalorder %s44_s6, %s44_s6 }
  0x1b   :  { %p341_p10 = scmp.ne.s32.totalorder %s44_s6, %s340_s1  ;;  %p346_p12 = scmp.lt.s32.totalorder %s340_s1, %s340_s1 }
  0x1d   :  { %p347_p13 = por %p346_p12, %p345_p11 }
  0x1f   :  { %p348_p0 = pnand %p347_p13, %p341_p10 }
  0x21   :  { %351 = shalt.err (!%p348_p0)
}
  0x22   :  { %49 = dma.hbm_to_vmem [thread:$0]  %s472_s2, 256, %s44_s6, [#allocation6], %s402_s23, %s402_s23, %s403_s24  }
  0x23   :  { %s360_s0 = scalar_lea.vmem %s56_s8, 2048  ;;  %p365_p2 = scmp.lt.s32.totalorder %s56_s8, %s56_s8 }
  0x24   :  { %p361_p1 = scmp.ne.s32.totalorder %s56_s8, %s360_s0  ;;  %p366_p3 = scmp.lt.s32.totalorder %s360_s0, %s360_s0 }
  0x26   :  { %p367_p4 = por %p366_p3, %p365_p2 }
  0x28   :  { %p368_p5 = pnand %p367_p4, %p361_p1 }
  0x2a   :  { %371 = shalt.err (!%p368_p5)
}
  0x2b   :  { %61 = dma.hbm_to_vmem [thread:$0]  %s473_s3, 2048, %s56_s8, [#allocation9], %s402_s23, %s402_s23, %s403_s24  }
  0x2c   :  { %392 = dma.done.wait [#allocation3], 256  }
  0x2d   :  { %393 = vsyncadd [#allocation3], 4294967040 }
  0x2e   :  { %394 = dma.done.wait [#allocation6], 512  }
  0x2f   :  { %395 = vsyncadd [#allocation6], 4294966784 }
  0x30   :  { %396 = dma.done.wait [#allocation9], 2048  }
  0x31   :  { %397 = vsyncadd [#allocation9], 4294965248  ;;  %v97_v0 = vld [vmem:[#allocation8 + $0x78] sm:$0xff]  ;;  %v96_v1 = vld [vmem:[#allocation8 + $0x70] sm:$0xff] }
  0x32   :  { %242 = vmatprep.subr.mxu0 %v97_v0  ;;  %v95_v2 = vld [vmem:[#allocation8 + $0x68] sm:$0xff]  ;;  %v94_v3 = vld [vmem:[#allocation8 + $0x60] sm:$0xff]  ;;  %v76_v4 = vld [vmem:[#allocation2] sm:$0xff] }
  0x33   :  { %243 = vmatpush3.msra.mxu0 %v97_v0  ;;  %v78_v5 = vld [vmem:[#allocation5] sm:$0xff]  ;;  %v93_v6 = vld [vmem:[#allocation8 + $0x58] sm:$0xff]  ;;  %v92_v8 = vld [vmem:[#allocation8 + $0x50] sm:$0xff] }
  0x34   :  { %244 = vmatprep.subr.mxu0 %v96_v1  ;;  %v80_v7 = vmul.f32 %v78_v5, %v76_v4  ;;  %v91_v9 = vld [vmem:[#allocation8 + $0x48] sm:$0xff]  ;;  %v90_v10 = vld [vmem:[#allocation8 + $0x40] sm:$0xff]  ;;  %v89_v11 = vld [vmem:[#allocation8 + $0x38] sm:$0xff] }
  0x35   :  { %245 = vmatpush3.msra.mxu0 %v96_v1  ;;  %v88_v12 = vld [vmem:[#allocation8 + $0x30] sm:$0xff]  ;;  %v87_v13 = vld [vmem:[#allocation8 + $0x28] sm:$0xff]  ;;  %v86_v14 = vld [vmem:[#allocation8 + $0x20] sm:$0xff] }
  0x36   :  { %246 = vmatprep.subr.mxu0 %v95_v2  ;;  %274 = vmatprep.mubr.f32.mxu0 %v80_v7  ;;  %v85_v15 = vld [vmem:[#allocation8 + $0x18] sm:$0xff]  ;;  %v84_v16 = vld [vmem:[#allocation8 + $0x10] sm:$0xff]  ;;  %v83_v17 = vld [vmem:[#allocation8 + $0x8] sm:$0xff] }
  0x37   :  { %247 = vmatpush3.msra.mxu0 %v95_v2  ;;  %v77_v18 = vld [vmem:[#allocation2 + $0x8] sm:$0xff]  ;;  %v79_v19 = vld [vmem:[#allocation5 + $0x8] sm:$0xff]  ;;  %v82_v20 = vld [vmem:[#allocation8] sm:$0xff] }
  0x38   :  { %248 = vmatprep.subr.mxu0 %v94_v3  ;;  %v81_v21 = vmul.f32 %v79_v19, %v77_v18  ;;  %v223_v23 = vld [vmem:[%s474_s4] ss:$0 sm:$0xff]  ;;  %v199_v42 = vld [vmem:[#allocation7 + $0x8] sm:$0xff]  ;;  %s406_s4 = smov [#allocation10]  }
  0x39   :  { %249 = vmatpush3.msra.mxu0 %v94_v3  ;;  %v198_v38 = vld [vmem:[#allocation7] sm:$0xff]  ;;  %s209_s13 = sshll.u32 %s406_s4, 4  ;;  %s210_s13 = int_to_ptr.vmem [resolvable:$true] %s209_s13 }
  0x3a   :  { %250 = vmatprep.subr.mxu0 %v93_v6  ;;  %s372_s14 = scalar_lea.vmem %s210_s13, 256  ;;  %p377_p7 = scmp.lt.s32.totalorder %s210_s13, %s210_s13 }
  0x3b   :  { %251 = vmatpush3.msra.mxu0 %v93_v6  ;;  %p373_p6 = scmp.ne.s32.totalorder %s210_s13, %s372_s14  ;;  %p378_p8 = scmp.lt.s32.totalorder %s372_s14, %s372_s14 }
  0x3c   :  { %252 = vmatprep.subr.mxu0 %v92_v8 }
  0x3d   :  { %253 = vmatpush3.msra.mxu0 %v92_v8  ;;  %p379_p9 = por %p378_p8, %p377_p7 }
  0x3e   :  { %254 = vmatprep.subr.mxu0 %v91_v9 }
  0x3f   :  { %255 = vmatpush3.msra.mxu0 %v91_v9  ;;  %p380_p10 = pnand %p379_p9, %p373_p6 }
  0x40   :  { %256 = vmatprep.subr.mxu0 %v90_v10 }
  0x41   :  { %257 = vmatpush3.msra.mxu0 %v90_v10 }
  0x42   :  { %258 = vmatprep.subr.mxu0 %v89_v11 }
  0x43   :  { %259 = vmatpush3.msra.mxu0 %v89_v11 }
  0x44   :  { %260 = vmatprep.subr.mxu0 %v88_v12 }
  0x45   :  { %261 = vmatpush3.msra.mxu0 %v88_v12 }
  0x46   :  { %262 = vmatprep.subr.mxu0 %v87_v13 }
  0x47   :  { %263 = vmatpush3.msra.mxu0 %v87_v13 }
  0x48   :  { %264 = vmatprep.subr.mxu0 %v86_v14 }
  0x49   :  { %265 = vmatpush3.msra.mxu0 %v86_v14 }
  0x4a   :  { %266 = vmatprep.subr.mxu0 %v85_v15 }
  0x4b   :  { %267 = vmatpush3.msra.mxu0 %v85_v15 }
  0x4c   :  { %268 = vmatprep.subr.mxu0 %v84_v16 }
  0x4d   :  { %269 = vmatpush3.msra.mxu0 %v84_v16 }
  0x4e   :  { %270 = vmatprep.subr.mxu0 %v83_v17 }
  0x4f   :  { %271 = vmatpush3.msra.mxu0 %v83_v17 }
  0x50   :  { %272 = vmatprep.subr.mxu0 %v82_v20 }
  0x51   :  { %273 = vmatpush3.msra.mxu0 %v82_v20 }
  0x52   :  { %275 = vmatmul.mubr.f32.vlgmr.msra.gmra.mxu0 %v81_v21 }
 0x112   :  { %v276_v22 = vpop.f32.mrf.mxu0 }
 0x113   :  { %v177_v26 = vadd.f32 %v276_v22, %v223_v23 }
 0x114   :  { %v171_v24 = vpop.f32.mrf.mxu0 }
 0x115   :  { %v172_v25 = vadd.f32 %v223_v23, %v171_v24 }
 0x117   :  { %180 = vmax.xlane.f32.xlu0 %v172_v25 }
 0x11b   :  { %182 = vmax.xlane.f32.xlu0 %v177_v26 }
 0x1a0   :  { %v181_v27 = vpop.xlane.xlu0 %180 }
 0x1a1   :  { %v184_v28 = vsub.f32 %v172_v25, %v181_v27 }
 0x1a3   :  { %v186_v29 = vmul.f32 1.442695, %v184_v28 }
 0x1a4   :  { %v183_v30 = vpop.xlane.xlu0 %182 }
 0x1a5   :  { %284 = vpow2.f32 %v186_v29  ;;  %v185_v31 = vsub.f32 %v177_v26, %v183_v30 }
 0x1a7   :  { %v188_v32 = vmul.f32 1.442695, %v185_v31 }
 0x1a9   :  { %286 = vpow2.f32 %v188_v32 }
 0x1b2   :  { %v285_v33 = vpop.eup %284 }
 0x1b3   :  { %190 = vadd.xlane.f32.xlu1 %v285_v33 }
 0x1b6   :  { %v287_v34 = vpop.eup %286 }
 0x1b7   :  { %192 = vadd.xlane.f32.xlu1 %v287_v34 }
 0x23c   :  { %v191_v35 = vpop.xlane.xlu1 %190 }
 0x23d   :  { %288 = vrcp.f32 %v191_v35 }
 0x240   :  { %v193_v36 = vpop.xlane.xlu1 %192 }
 0x241   :  { %290 = vrcp.f32 %v193_v36 }
 0x24a   :  { %v289_v37 = vpop.eup %288 }
 0x24b   :  { %v196_v39 = vmul.f32 %v289_v37, %v285_v33 }
 0x24d   :  { %v200_v40 = vmul.f32 %v198_v38, %v196_v39 }
 0x24e   :  { %v291_v41 = vpop.eup %290 }
 0x24f   :  { %v197_v43 = vmul.f32 %v291_v41, %v287_v34  ;;  %202 = vst [vmem:[#allocation10] sm:$0xff] %v200_v40 }
 0x251   :  { %v201_v44 = vmul.f32 %v199_v42, %v197_v43 }
 0x253   :  { %203 = vst [vmem:[#allocation10 + $0x8] sm:$0xff] %v201_v44 }
 0x254   :  { %383 = shalt.err (!%p380_p10)
}
 0x255   :  { %215 = dma.vmem_to_hbm [thread:$0]  %s210_s13, 256, %s475_s5, [#allocation4], %s402_s23, %s402_s23, %s403_s24  }
 0x256   :  { %398 = dma.done.wait [#allocation4], 256  }
 0x257   :  { %399 = vsyncadd [#allocation4], 4294967040 }
 0x258   :  { %219 = vsyncpa [#allocation3], 1 }
 0x259   :  { %220 = vsyncpa [#allocation6], 1 }
 0x25a   :  { %221 = vsyncpa [#allocation9], 1 }
 0x25b   :  { %222 = vsyncpa [#allocation4], 1 }

</bundles_post_ra>
